<compile_context>
chip_gen: v5e
topology: v5e:2x2
jax: 0.10.0
libtpu: 0.0.40
codegen_flags: <defaults>
</compile_context>

<pallas_src>
import functools

import jax
import jax.numpy as jnp
from jax import lax
from jax.experimental import pallas as pl
from jax.experimental.pallas import tpu as pltpu


# ---------------------------------------------------------------------------
# Kernels
# ---------------------------------------------------------------------------

def _nnclr_resident_kernel(nn_ref, pn_ref, out_ref, *, inv_temp, tile_m):
    """Row-tiled kernel with the full (pre-normalized) p resident in VMEM."""
    i = pl.program_id(0)

    # Normalize this nn row tile in f32 (touched exactly once per row, hidden
    # under the input pipeline) and fold 1/temperature into the scale.
    nn = nn_ref[...].astype(jnp.float32)                                # (tm, D)
    inv_norm = lax.rsqrt(
        jnp.maximum(jnp.sum(nn * nn, axis=-1, keepdims=True),
                    jnp.float32(1e-24)))                                # (tm, 1)
    nn_s = nn * (inv_norm * jnp.float32(inv_temp))                      # (tm, D)

    # logits[r, c] = <nn_s_r, p_n_c>: contract last dims of both operands (no
    # explicit transpose relayout); bf16 operands, f32 accumulation.
    logits = lax.dot_general(
        nn_s.astype(pn_ref.dtype), pn_ref[...],
        dimension_numbers=(((1,), (1,)), ((), ())),
        preferred_element_type=jnp.float32)                             # (tm, N)

    # Diagonal targets: local row r pairs with global column i*tm + r.  The
    # resident p is already normalized, so this is one multiply + row reduce.
    row0 = pl.multiple_of(i * tile_m, tile_m)
    p_rows = pn_ref[pl.ds(row0, tile_m), :].astype(jnp.float32)         # (tm, D)
    diag = jnp.sum(nn_s * p_rows, axis=-1, keepdims=True)               # (tm, 1)

    # Cosine similarities are <= 1, so every logit <= 1/T: use the constant
    # bound instead of a per-row cross-lane max pass (stable, one fused pass).
    lse = jnp.float32(inv_temp) + jnp.log(
        jnp.sum(jnp.exp(logits - jnp.float32(inv_temp)),
                axis=-1, keepdims=True))                                # (tm, 1)

    partial = jnp.sum(lse - diag)                  # this tile's CE sum
    out_ref[...] = jnp.full(out_ref.shape, partial, dtype=jnp.float32)


def _nnclr_tiled_kernel(nn_ref, pn_ref, out_ref, nns_ref, acc_ref, diag_ref,
                        *, inv_temp):
    """Flash-style kernel: grid (row tiles, p-column tiles), online exp-sum.

    The reduction (column) axis is last / "arbitrary".  Because cosine logits
    are bounded by 1/T, no running max is needed -- only a running exp-sum.
    """
    i = pl.program_id(0)
    j = pl.program_id(1)
    nj = pl.num_programs(1)

    @pl.when(j == 0)
    def _():
        # Normalize this nn row tile once per i (not once per (i, j) step).
        nn = nn_ref[...].astype(jnp.float32)
        inv_norm = lax.rsqrt(
            jnp.maximum(jnp.sum(nn * nn, axis=-1, keepdims=True),
                        jnp.float32(1e-24)))
        nns_ref[...] = nn * (inv_norm * jnp.float32(inv_temp))
        acc_ref[...] = jnp.zeros_like(acc_ref)
        diag_ref[...] = jnp.zeros_like(diag_ref)

    nn_s = nns_ref[...]                                                 # (tm, D) f32

    logits = lax.dot_general(
        nn_s.astype(pn_ref.dtype), pn_ref[...],
        dimension_numbers=(((1,), (1,)), ((), ())),
        preferred_element_type=jnp.float32)                             # (tm, tn)

    acc_ref[...] += jnp.sum(jnp.exp(logits - jnp.float32(inv_temp)),
                            axis=-1, keepdims=True)                     # (tm, 1)

    @pl.when(j == i)   # tn == tm, so the diagonal lies entirely in block j == i
    def _():
        p_rows = pn_ref[...].astype(jnp.float32)                        # (tm, D)
        diag_ref[...] = jnp.sum(nn_s * p_rows, axis=-1, keepdims=True)

    @pl.when(j == nj - 1)
    def _():
        lse = jnp.float32(inv_temp) + jnp.log(acc_ref[...])             # (tm, 1)
        out_ref[...] = jnp.full(out_ref.shape,
                                jnp.sum(lse - diag_ref[...]),
                                dtype=jnp.float32)


# ---------------------------------------------------------------------------
# VMEM-aware tile / path selection
# ---------------------------------------------------------------------------

_TILE_CANDIDATES = (512, 256, 128, 64, 32, 16, 8)


def _vmem_capacity_bytes():
    try:
        return int(pltpu.get_tpu_info().vmem_capacity_bytes)
    except Exception:
        return 64 * 1024 * 1024   # conservative fallback: v7x per-TC VMEM


def _tile_candidates(n):
    cands = [t for t in _TILE_CANDIDATES if n % t == 0]
    # TODO(synk): pad + mask rows/columns so N that is not a multiple of 8
    # doesn't fall back to a single whole-problem tile.
    return cands if cands else [n]


def _pick_tile(n, fits):
    cands = _tile_candidates(n)
    # Prefer >= 2 row tiles so both v7x TensorCores get balanced work.
    for tm in cands:
        if 2 * tm <= n and fits(tm):
            return tm
    for tm in cands:
        if fits(tm):
            return tm
    return cands[-1]


def _resident_vmem_bytes(n, d, tm, p_item):
    return (2 * n * d * p_item            # resident p_n (assume 2 bufs worst case)
            + 2 * tm * d * 4              # nn tile, double buffered
            + tm * d * (4 + p_item)       # normalized nn + matmul-dtype copy
            + 2 * tm * n * 4              # logits + exp temporary
            + 2 * 8 * 128 * 4             # partial-sum output block
            + (2 << 20))                  # headroom


def _tiled_vmem_bytes(n, d, tm, p_item):
    return (2 * tm * d * 4                # nn tile, double buffered
            + 2 * tm * d * p_item         # p_n column tile, double buffered
            + tm * d * (4 + p_item)       # nn_s scratch + matmul-dtype copy
            + 2 * tm * tm * 4             # logits + exp temporary
            + 2 * tm * 4                  # acc + diag scratch
            + 2 * 8 * 128 * 4
            + (2 << 20))


# ---------------------------------------------------------------------------
# Wrapper
# ---------------------------------------------------------------------------

def nearest_neighbor_loss(nn, p, temperature=0.5, *, use_bf16=True,
                          force_tiled=None):
    """NNCLR loss. nn, p: (N, D) arrays. Returns scalar f32 loss."""
    assert nn.ndim == 2 and nn.shape == p.shape
    N, D = nn.shape
    inv_temp = 1.0 / float(temperature)

    # Normalize p once in the wrapper (O(N*D), XLA fuses it) so the resident /
    # streamed p blocks are never re-normalized inside the grid loop.
    p32 = p.astype(jnp.float32)
    p_n = p32 * lax.rsqrt(
        jnp.maximum(jnp.sum(p32 * p32, axis=-1, keepdims=True),
                    jnp.float32(1e-24)))
    mm_dtype = jnp.bfloat16 if use_bf16 else jnp.float32
    p_n = p_n.astype(mm_dtype)          # MXU-native operand; halves p's VMEM
    nn = nn.astype(jnp.float32)         # normalization / exp stay f32 (v5e EUP)

    cap = _vmem_capacity_bytes()
    limit_cap = int(0.75 * cap)
    budget = int(0.55 * cap)            # slack for estimate under-counting
    p_item = jnp.dtype(mm_dtype).itemsize

    resident_fits = lambda tm: _resident_vmem_bytes(N, D, tm, p_item) <= budget
    tiled_fits = lambda tm: _tiled_vmem_bytes(N, D, tm, p_item) <= budget

    if force_tiled is None:
        use_tiled = not any(resident_fits(t) for t in _tile_candidates(N))
    else:
        use_tiled = bool(force_tiled)

    if not use_tiled:
        # ---------------- resident-p path ----------------
        tm = _pick_tile(N, resident_fits)
        num_tiles = N // tm
        est = _resident_vmem_bytes(N, D, tm, p_item)
        vmem_limit = int(min(limit_cap, max(2 * est, 16 << 20)))
        kernel = functools.partial(_nnclr_resident_kernel,
                                   inv_temp=inv_temp, tile_m=tm)

        def call(single_buffer_p):
            if single_buffer_p:
                # Constant index map -> one buffer is enough for resident p.
                p_spec = pl.BlockSpec((N, D), lambda i: (0, 0),
                                      pipeline_mode=pl.Buffered(1))
            else:
                p_spec = pl.BlockSpec((N, D), lambda i: (0, 0))
            return pl.pallas_call(
                kernel,
                out_shape=jax.ShapeDtypeStruct((num_tiles, 8, 128), jnp.float32),
                grid_spec=pltpu.PrefetchScalarGridSpec(
                    num_scalar_prefetch=0,
                    grid=(num_tiles,),
                    in_specs=[
                        pl.BlockSpec((tm, D), lambda i: (i, 0)),  # nn row tile
                        p_spec,                                   # resident p_n
                    ],
                    out_specs=pl.BlockSpec((1, 8, 128), lambda i: (i, 0, 0)),
                ),
                compiler_params=pltpu.CompilerParams(
                    dimension_semantics=("parallel",),
                    vmem_limit_bytes=vmem_limit,
                ),
            )(nn, p_n)

        try:
            partials = call(True)
        except Exception:
            # Runtime rejected single-buffering of the resident block; the
            # default double-buffered spec is still correct.
            partials = call(False)
    else:
        # ---------------- column-tiled (online exp-sum) path ----------------
        tm = _pick_tile(N, tiled_fits)
        num_tiles = N // tm
        est = _tiled_vmem_bytes(N, D, tm, p_item)
        vmem_limit = int(min(limit_cap, max(2 * est, 16 << 20)))
        kernel = functools.partial(_nnclr_tiled_kernel, inv_temp=inv_temp)

        partials = pl.pallas_call(
            kernel,
            out_shape=jax.ShapeDtypeStruct((num_tiles, 8, 128), jnp.float32),
            grid_spec=pltpu.PrefetchScalarGridSpec(
                num_scalar_prefetch=0,
                grid=(num_tiles, num_tiles),          # (row tiles, p tiles)
                in_specs=[
                    pl.BlockSpec((tm, D), lambda i, j: (i, 0)),   # nn row tile
                    pl.BlockSpec((tm, D), lambda i, j: (j, 0)),   # p_n col tile
                ],
                out_specs=pl.BlockSpec((1, 8, 128), lambda i, j: (i, 0, 0)),
                scratch_shapes=[
                    pltpu.VMEM((tm, D), jnp.float32),   # normalized nn tile
                    pltpu.VMEM((tm, 1), jnp.float32),   # running exp-sum
                    pltpu.VMEM((tm, 1), jnp.float32),   # diagonal logits
                ],
            ),
            compiler_params=pltpu.CompilerParams(
                dimension_semantics=("parallel", "arbitrary"),
                vmem_limit_bytes=vmem_limit,
            ),
        )(nn, p_n)

    # TODO(synk): dist_gather / get_rank multi-device gather not implemented
    # (single-device semantics: gather is identity, rank=0).
    return jnp.sum(partials[:, 0, 0]) / jnp.float32(N)


# ---------------------------------------------------------------------------
# Pure-JAX reference
# ---------------------------------------------------------------------------

def _reference_loss(nn, p, temperature=0.5):
    eps = 1e-12
    nn_n = nn / jnp.maximum(jnp.linalg.norm(nn, axis=-1, keepdims=True), eps)
    p_n = p / jnp.maximum(jnp.linalg.norm(p, axis=-1, keepdims=True), eps)
    logits = nn_n @ p_n.T / temperature
    labels = jnp.arange(nn.shape[0])
    logp = jax.nn.log_softmax(logits, axis=-1)
    return -jnp.mean(logp[jnp.arange(nn.shape[0]), labels])


if __name__ == "__main__":
    key = jax.random.PRNGKey(0)
    k1, k2, k3, k4 = jax.random.split(key, 4)

    # Small shape (N x D feature batch), resident-p path.
    N, D = 8, 32
    nn_feats = jax.random.normal(k1, (N, D), dtype=jnp.float32)
    p_feats = jax.random.normal(k2, (N, D), dtype=jnp.float32)
    loss = jax.block_until_ready(
        nearest_neighbor_loss(nn_feats, p_feats, temperature=0.5))
    ref = _reference_loss(nn_feats, p_feats, temperature=0.5)
    assert jnp.allclose(loss, ref, atol=3e-2, rtol=3e-2), (loss, ref)

    # Multi-tile shape: exercise the resident path and the forced
    # column-tiled online-LSE path (bf16 matmul -> loose tolerance).
    N2, D2 = 256, 64
    nn2 = jax.random.normal(k3, (N2, D2), dtype=jnp.float32)
    p2 = jax.random.normal(k4, (N2, D2), dtype=jnp.float32)
    ref2 = _reference_loss(nn2, p2, temperature=0.5)

    loss_res = jax.block_until_ready(
        nearest_neighbor_loss(nn2, p2, temperature=0.5))
    assert jnp.allclose(loss_res, ref2, atol=3e-2, rtol=3e-2), (loss_res, ref2)

    loss_tiled = jax.block_until_ready(
        nearest_neighbor_loss(nn2, p2, temperature=0.5, force_tiled=True))
    assert jnp.allclose(loss_tiled, ref2, atol=3e-2, rtol=3e-2), (loss_tiled, ref2)

    print("KERNEL_OK")
</pallas_src>

<mosaic_0001>
module attributes {stable_mosaic.version = 11 : i64} {
  func.func @_nnclr_resident_kernel(%arg0: i32, %arg1: memref<8x32xf32, #tpu.memory_space<vmem>>, %arg2: memref<8x32xbf16, #tpu.memory_space<vmem>>, %arg3: memref<1x8x128xf32, #tpu.memory_space<vmem>>) attributes {dimension_semantics = [#tpu.dimension_semantics<parallel>], iteration_bounds = array<i64: 1>, scalar_prefetch = 0 : i64, scratch_operands = 0 : i64, tpu.core_type = #tpu.core_type<tc>, window_params = [{transform_indices = @transform_0, window_bounds = array<i64: 8, 32>}, {pipeline_mode = #tpu.pipeline_mode<synchronous>, transform_indices = @transform_1, window_bounds = array<i64: 8, 32>}, {transform_indices = @transform_2, window_bounds = array<i64: 1, 8, 128>}]} {
    %c0 = arith.constant 0 : index
    %c0_0 = arith.constant 0 : index
    %0 = vector.load %arg1[%c0, %c0_0] : memref<8x32xf32, #tpu.memory_space<vmem>>, vector<8x32xf32>
    %1 = arith.mulf %0, %0 : vector<8x32xf32>
    %cst = arith.constant dense<0.000000e+00> : vector<8xf32>
    %2 = vector.multi_reduction <add>, %1, %cst [1] : vector<8x32xf32> to vector<8xf32>
    %3 = vector.shape_cast %2 : vector<8xf32> to vector<8x1xf32>
    %cst_1 = arith.constant 1.000000e-24 : f32
    %4 = vector.broadcast %cst_1 : f32 to vector<8x1xf32>
    %5 = arith.maximumf %3, %4 : vector<8x1xf32>
    %6 = math.rsqrt %5 : vector<8x1xf32>
    %cst_2 = arith.constant 2.000000e+00 : f32
    %7 = vector.broadcast %cst_2 : f32 to vector<8x1xf32>
    %8 = arith.mulf %6, %7 : vector<8x1xf32>
    %9 = vector.broadcast %8 : vector<8x1xf32> to vector<8x32xf32>
    %10 = arith.mulf %0, %9 : vector<8x32xf32>
    %11 = arith.truncf %10 : vector<8x32xf32> to vector<8x32xbf16>
    %c0_3 = arith.constant 0 : index
    %c0_4 = arith.constant 0 : index
    %12 = vector.load %arg2[%c0_3, %c0_4] : memref<8x32xbf16, #tpu.memory_space<vmem>>, vector<8x32xbf16>
    %cst_5 = arith.constant dense<0.000000e+00> : vector<8x8xf32>
    %13 = tpu.matmul %11, %12, %cst_5 {dimension_numbers = #tpu.dot_dimension_numbers<[1], [1], [0], [0], [0, 0, 1, 0], [], []>} : vector<8x32xbf16>, vector<8x32xbf16>, vector<8x8xf32> -> vector<8x8xf32>
    %c8_i32 = arith.constant 8 : i32
    %14 = arith.muli %arg0, %c8_i32 : i32
    %15 = tpu.assume_multiple %14, 8 : i32
    %16 = arith.index_cast %15 : i32 to index
    %c0_6 = arith.constant 0 : index
    %17 = vector.load %arg2[%16, %c0_6] : memref<8x32xbf16, #tpu.memory_space<vmem>>, vector<8x32xbf16>
    %18 = arith.extf %17 : vector<8x32xbf16> to vector<8x32xf32>
    %19 = arith.mulf %10, %18 : vector<8x32xf32>
    %cst_7 = arith.constant dense<0.000000e+00> : vector<8xf32>
    %20 = vector.multi_reduction <add>, %19, %cst_7 [1] : vector<8x32xf32> to vector<8xf32>
    %21 = vector.shape_cast %20 : vector<8xf32> to vector<8x1xf32>
    %cst_8 = arith.constant 2.000000e+00 : f32
    %22 = vector.broadcast %cst_8 : f32 to vector<8x8xf32>
    %23 = arith.subf %13, %22 : vector<8x8xf32>
    %24 = math.exp %23 : vector<8x8xf32>
    %cst_9 = arith.constant dense<0.000000e+00> : vector<8xf32>
    %25 = vector.multi_reduction <add>, %24, %cst_9 [1] : vector<8x8xf32> to vector<8xf32>
    %26 = vector.shape_cast %25 : vector<8xf32> to vector<8x1xf32>
    %27 = math.log %26 : vector<8x1xf32>
    %cst_10 = arith.constant 2.000000e+00 : f32
    %28 = vector.broadcast %cst_10 : f32 to vector<8x1xf32>
    %29 = arith.addf %28, %27 : vector<8x1xf32>
    %30 = arith.subf %29, %21 : vector<8x1xf32>
    %31 = vector.shape_cast %30 : vector<8x1xf32> to vector<1x8x1xf32>
    %cst_11 = arith.constant dense<0.000000e+00> : vector<1xf32>
    %32 = vector.multi_reduction <add>, %31, %cst_11 [1, 2] : vector<1x8x1xf32> to vector<1xf32>
    %33 = vector.shape_cast %32 : vector<1xf32> to vector<1x1x1xf32>
    %34 = vector.extract %33[0, 0, 0] : f32 from vector<1x1x1xf32>
    %35 = vector.broadcast %34 : f32 to vector<1x8x128xf32>
    %c0_12 = arith.constant 0 : index
    %c0_13 = arith.constant 0 : index
    %c0_14 = arith.constant 0 : index
    %36 = vector.load %arg3[%c0_12, %c0_13, %c0_14] : memref<1x8x128xf32, #tpu.memory_space<vmem>>, vector<1x8x128xf32>
    tpu.vector_store %arg3[%c0_12, %c0_13, %c0_14], %35 {strides = array<i32>} : memref<1x8x128xf32, #tpu.memory_space<vmem>>, vector<1x8x128xf32>,
    return
  }
  func.func @transform_0(%arg0: i32) -> (i32, i32) {
    %c0_i32 = arith.constant 0 : i32
    %c0_i32_0 = arith.constant 0 : i32
    return %arg0, %c0_i32 : i32, i32
  }
  func.func @transform_1(%arg0: i32) -> (i32, i32) {
    %c0_i32 = arith.constant 0 : i32
    %c0_i32_0 = arith.constant 0 : i32
    %c0_i32_1 = arith.constant 0 : i32
    return %c0_i32, %c0_i32_0 : i32, i32
  }
  func.func @transform_2(%arg0: i32) -> (i32, i32, i32) {
    %c0_i32 = arith.constant 0 : i32
    %c0_i32_0 = arith.constant 0 : i32
    %c0_i32_1 = arith.constant 0 : i32
    return %arg0, %c0_i32, %c0_i32_0 : i32, i32, i32
  }
}

module attributes {stable_mosaic.version = 11 : i64} {
  func.func @_nnclr_resident_kernel(%arg0: i32, %arg1: memref<8x32xf32, #tpu.memory_space<vmem>>, %arg2: memref<8x32xbf16, #tpu.memory_space<vmem>>, %arg3: memref<1x8x128xf32, #tpu.memory_space<vmem>>) attributes {dimension_semantics = [#tpu.dimension_semantics<parallel>], iteration_bounds = array<i64: 1>, scalar_prefetch = 0 : i64, scratch_operands = 0 : i64, tpu.core_type = #tpu.core_type<tc>, window_params = [{transform_indices = @transform_0, window_bounds = array<i64: 8, 32>}, {pipeline_mode = #tpu.pipeline_mode<synchronous>, transform_indices = @transform_1, window_bounds = array<i64: 8, 32>}, {transform_indices = @transform_2, window_bounds = array<i64: 1, 8, 128>}]} {
    %c0 = arith.constant 0 : index
    %c0_0 = arith.constant 0 : index
    %0 = vector.load %arg1[%c0, %c0_0] : memref<8x32xf32, #tpu.memory_space<vmem>>, vector<8x32xf32>
    %1 = arith.mulf %0, %0 : vector<8x32xf32>
    %cst = arith.constant dense<0.000000e+00> : vector<8xf32>
    %2 = vector.multi_reduction <add>, %1, %cst [1] : vector<8x32xf32> to vector<8xf32>
    %3 = vector.shape_cast %2 : vector<8xf32> to vector<8x1xf32>
    %cst_1 = arith.constant 1.000000e-24 : f32
    %4 = vector.broadcast %cst_1 : f32 to vector<8x1xf32>
    %5 = arith.maximumf %3, %4 : vector<8x1xf32>
    %6 = math.rsqrt %5 : vector<8x1xf32>
    %cst_2 = arith.constant 2.000000e+00 : f32
    %7 = vector.broadcast %cst_2 : f32 to vector<8x1xf32>
    %8 = arith.mulf %6, %7 : vector<8x1xf32>
    %9 = vector.broadcast %8 : vector<8x1xf32> to vector<8x32xf32>
    %10 = arith.mulf %0, %9 : vector<8x32xf32>
    %11 = arith.truncf %10 : vector<8x32xf32> to vector<8x32xbf16>
    %c0_3 = arith.constant 0 : index
    %c0_4 = arith.constant 0 : index
    %12 = vector.load %arg2[%c0_3, %c0_4] : memref<8x32xbf16, #tpu.memory_space<vmem>>, vector<8x32xbf16>
    %cst_5 = arith.constant dense<0.000000e+00> : vector<8x8xf32>
    %13 = tpu.matmul %11, %12, %cst_5 {dimension_numbers = #tpu.dot_dimension_numbers<[1], [1], [0], [0], [0, 0, 1, 0], [], []>} : vector<8x32xbf16>, vector<8x32xbf16>, vector<8x8xf32> -> vector<8x8xf32>
    %c8_i32 = arith.constant 8 : i32
    %14 = arith.muli %arg0, %c8_i32 : i32
    %15 = tpu.assume_multiple %14, 8 : i32
    %16 = arith.index_cast %15 : i32 to index
    %c0_6 = arith.constant 0 : index
    %17 = vector.load %arg2[%16, %c0_6] : memref<8x32xbf16, #tpu.memory_space<vmem>>, vector<8x32xbf16>
    %18 = arith.extf %17 : vector<8x32xbf16> to vector<8x32xf32>
    %19 = arith.mulf %10, %18 : vector<8x32xf32>
    %cst_7 = arith.constant dense<0.000000e+00> : vector<8xf32>
    %20 = vector.multi_reduction <add>, %19, %cst_7 [1] : vector<8x32xf32> to vector<8xf32>
    %21 = vector.shape_cast %20 : vector<8xf32> to vector<8x1xf32>
    %cst_8 = arith.constant 2.000000e+00 : f32
    %22 = vector.broadcast %cst_8 : f32 to vector<8x8xf32>
    %23 = arith.subf %13, %22 : vector<8x8xf32>
    %24 = math.exp %23 : vector<8x8xf32>
    %cst_9 = arith.constant dense<0.000000e+00> : vector<8xf32>
    %25 = vector.multi_reduction <add>, %24, %cst_9 [1] : vector<8x8xf32> to vector<8xf32>
    %26 = vector.shape_cast %25 : vector<8xf32> to vector<8x1xf32>
    %27 = math.log %26 : vector<8x1xf32>
    %cst_10 = arith.constant 2.000000e+00 : f32
    %28 = vector.broadcast %cst_10 : f32 to vector<8x1xf32>
    %29 = arith.addf %28, %27 : vector<8x1xf32>
    %30 = arith.subf %29, %21 : vector<8x1xf32>
    %31 = vector.shape_cast %30 : vector<8x1xf32> to vector<1x8x1xf32>
    %cst_11 = arith.constant dense<0.000000e+00> : vector<1xf32>
    %32 = vector.multi_reduction <add>, %31, %cst_11 [1, 2] : vector<1x8x1xf32> to vector<1xf32>
    %33 = vector.shape_cast %32 : vector<1xf32> to vector<1x1x1xf32>
    %34 = vector.extract %33[0, 0, 0] : f32 from vector<1x1x1xf32>
    %35 = vector.broadcast %34 : f32 to vector<1x8x128xf32>
    %c0_12 = arith.constant 0 : index
    %c0_13 = arith.constant 0 : index
    %c0_14 = arith.constant 0 : index
    %36 = vector.load %arg3[%c0_12, %c0_13, %c0_14] : memref<1x8x128xf32, #tpu.memory_space<vmem>>, vector<1x8x128xf32>
    tpu.vector_store %arg3[%c0_12, %c0_13, %c0_14], %35 {strides = array<i32>} : memref<1x8x128xf32, #tpu.memory_space<vmem>>, vector<1x8x128xf32>,
    return
  }
  func.func @transform_0(%arg0: i32) -> (i32, i32) {
    %c0_i32 = arith.constant 0 : i32
    %c0_i32_0 = arith.constant 0 : i32
    return %arg0, %c0_i32 : i32, i32
  }
  func.func @transform_1(%arg0: i32) -> (i32, i32) {
    %c0_i32 = arith.constant 0 : i32
    %c0_i32_0 = arith.constant 0 : i32
    %c0_i32_1 = arith.constant 0 : i32
    return %c0_i32, %c0_i32_0 : i32, i32
  }
  func.func @transform_2(%arg0: i32) -> (i32, i32, i32) {
    %c0_i32 = arith.constant 0 : i32
    %c0_i32_0 = arith.constant 0 : i32
    %c0_i32_1 = arith.constant 0 : i32
    return %arg0, %c0_i32, %c0_i32_0 : i32, i32, i32
  }
}

</mosaic_0001>

<bundles_post_ra>
// kernel: tpu_custom_call.1
= control target key start
LH: loop header
LB: loop body
LE: loop exit
PB: predicated region body
PF: predicated region fallthrough
CT: control target
= control target key end

     0   :  { %7 = vsyncpa [#allocation3], 0  ;;  %s258_s0 = inlined_call_operand.hbm [shape: f32[8,32], index: 0, kind: input, shape index: {}]   ;;  %s259_s1 = inlined_call_operand.hbm [shape: bf16[8,32], index: 1, kind: input, shape index: {}]   ;;  %s260_s2 = inlined_call_operand.hbm [shape: f32[1,8,128], index: 2, kind: output, shape index: {}]  }
   0x1   :  { %8 = vsyncpa [#allocation6], 0 }
   0x2   :  { %9 = vsyncpa [#allocation4], 0  ;;  %s15_s11 = sshll.u32 %s258_s0, 4  ;;  %s227_s12 = smov [#allocation2]   ;;  %s16_s11 = int_to_ptr.hbm [resolvable:$true] %s15_s11 }
   0x3   :  { %s17_s13 = sshll.u32 %s227_s12, 4  ;;  %s26_s16 = sshll.u32 %s259_s1, 4  ;;  %s18_s13 = int_to_ptr.vmem [resolvable:$true] %s17_s13  ;;  %s27_s16 = int_to_ptr.hbm [resolvable:$true] %s26_s16 }
   0x4   :  { %20 = dma.hbm_to_vmem [thread:$0]  %s16_s11, 128, %s18_s13, [#allocation3]  }
   0x5   :  { %s228_s17 = smov [#allocation5]  }
   0x6   :  { %s28_s18 = sshll.u32 %s228_s17, 4  ;;  %s29_s18 = int_to_ptr.vmem [resolvable:$true] %s28_s18 }
   0x7   :  { %31 = dma.hbm_to_vmem [thread:$0]  %s27_s16, 64, %s29_s18, [#allocation6]  }
   0x8   :  { %221 = dma.done.wait [#allocation3], 128  }
   0x9   :  { %222 = vsyncadd [#allocation3], 4294967168 }
   0xa   :  { %223 = dma.done.wait [#allocation6], 64  }
   0xb   :  { %224 = vsyncadd [#allocation6], 4294967232  ;;  %v41_v0 = vld [vmem:[#allocation2] sm:$0xff]  ;;  %vm43_vm0 = vcmask 261120   ;;  %v61_v3 = vld [vmem:[#allocation5] sm:$0xf] }
   0xc   :  { %v42_v1 = vmul.f32 %v41_v0, %v41_v0  ;;  %v66_v4 = vsel %vm43_vm0, %v61_v3, 0  ;;  %v86_v13 = vld [vmem:[#allocation5] sm:$0xf]  ;;  %vm95_vm4 = vcmask 64512   ;;  %vm103_vm5 = vcmask 7168   ;;  %s229_s0 = smov [#allocation7]  }
   0xd   :  { %75 = vmatpush.bf16.xpose.msra.mxu0 %v66_v4  ;;  %v87_v16 = vunpack.c.l.bf16 %v86_v13  ;;  %s121_s1 = sshll.u32 %s229_s0, 4  ;;  %s123_s21 = sshll.u32 %s260_s2, 4  ;;  %s122_s1 = int_to_ptr.vmem [resolvable:$true] %s121_s1  ;;  %s124_s21 = int_to_ptr.hbm [resolvable:$true] %s123_s21 }
   0xe   :  { %v44_v2 = vsel %vm43_vm0, %v42_v1, 0.0 }
   0xf   :  { %45 = vadd.xlane.f32.xlu0 %v44_v2 }
  0x82   :  { %v46_v5 = vpop.xlane.xlu0 %45 }
  0x83   :  { %v47_v6 = vmax.f32 %v46_v5, 1e-24 }
  0x85   :  { %143 = vrsqrt.f32 %v47_v6  ;;  %vm54_vm2 = vweird.f32 %v47_v6 }
  0x8b   :  { %v144_v7 = vpop.eup %143 }
  0x8c   :  { %v49_v8 = vmul.f32 %v144_v7, %v47_v6  ;;  %vm55_vm1 = vweird.f32 %v144_v7 }
  0x8d   :  { %vm56_vm3 = vmor %vm54_vm2, %vm55_vm1 }
  0x8e   :  { %v50_v9 = vmul.f32 %v144_v7, %v49_v8 }
  0x90   :  { %v51_v10 = vmul.f32 0.5, %v50_v9 }
  0x92   :  { %v52_v11 = vsub.f32 1.5, %v51_v10 }
  0x94   :  { %v53_v12 = vmul.f32 %v144_v7, %v52_v11 }
  0x96   :  { %v57_v14 = vsel %vm56_vm3, %v144_v7, %v53_v12 }
  0x97   :  { %v58_v15 = vmul.f32 2.0, %v57_v14 }
  0x99   :  { %v59_v17 = vmul.f32 %v58_v15, %v41_v0 }
  0x9b   :  { %v60_v18 = vpack.c.bf16 %v59_v17, %v59_v17  ;;  %v88_v19 = vmul.f32 %v87_v16, %v59_v17 }
  0x9d   :  { %136 = vmatmul.msk.bf16.vlgmr.msra.gmra.mxu0 %vm43_vm0, %v60_v18  ;;  %v89_v20 = vsel %vm43_vm0, %v88_v19, 0.0 }
  0x9e   :  { %90 = vadd.xlane.f32.xlu1 %v89_v20 }
 0x111   :  { %v91_v31 = vpop.xlane.xlu1 %90 }
 0x11a   :  { %v77_v21 = vpop.f32.mrf.mxu0 }
 0x11b   :  { %v137_v22 = vadd.f32 -2.0, %v77_v21 }
 0x11d   :  { %v93_v23 = vmul.f32 1.442695, %v137_v22 }
 0x11f   :  { %145 = vpow2.f32 %v93_v23 }
 0x122   :  { %v79_v24 = vpop.f32.mrf.mxu0 }
 0x125   :  { %v146_v25 = vpop.eup %145 }
 0x126   :  { %v96_v26 = vsel %vm95_vm4, %v146_v25, 0.0 }
 0x127   :  { %97 = vadd.xlane.f32.xlu0 %v96_v26 }
 0x19a   :  { %v98_v27 = vpop.xlane.xlu0 %97 }
 0x19b   :  { %147 = vlog2.f32 %v98_v27 }
 0x1a1   :  { %v148_v28 = vpop.eup %147 }
 0x1a2   :  { %v100_v29 = vmul.f32 0.6931472, %v148_v28 }
 0x1a4   :  { %v101_v30 = vadd.f32 2.0, %v100_v29 }
 0x1a6   :  { %v102_v32 = vsub.f32 %v101_v30, %v91_v31 }
 0x1a8   :  { %v104_v33 = vsel %vm103_vm5, %v102_v32, 0.0 }
 0x1a9   :  { %105 = vadd.xlane.f32.xlu1 %v104_v33 }
 0x21c   :  { %v106_v34 = vpop.xlane.xlu1 %105 }
 0x21d   :  { %v107_v35 = vrot.slane %v106_v34, 4 }
 0x21f   :  { %v108_v36 = vadd.f32 %v107_v35, %v106_v34 }
 0x221   :  { %v109_v37 = vrot.slane %v108_v36, 2 }
 0x223   :  { %v110_v38 = vadd.f32 %v109_v37, %v108_v36 }
 0x225   :  { %v111_v39 = vrot.slane %v110_v38, 1 }
 0x227   :  { %v112_v40 = vadd.f32 %v111_v39, %v110_v38 }
 0x229   :  { %138 = vpush %v112_v40 }
 0x25a   :  { %s139_s22 = spop %138 }
 0x25b   :  { %v114_v41 = vstv %s139_s22 }
 0x25c   :  { %115 = vst [vmem:[#allocation7] sm:$0xff] %v114_v41 }
 0x25d   :  { %126 = dma.vmem_to_hbm [thread:$0]  %s122_s1, 128, %s124_s21, [#allocation4]  }
 0x25e   :  { %225 = dma.done.wait [#allocation4], 128  }
 0x25f   :  { %226 = vsyncadd [#allocation4], 4294967168 }
 0x260   :  { %131 = vsyncpa [#allocation3], 1 }
 0x261   :  { %132 = vsyncpa [#allocation6], 1 }
 0x262   :  { %133 = vsyncpa [#allocation4], 1 }

// kernel: tpu_custom_call.1
= control target key start
LH: loop header
LB: loop body
LE: loop exit
PB: predicated region body
PF: predicated region fallthrough
CT: control target
= control target key end

     0   :  { %7 = vsyncpa [#allocation3], 0  ;;  %s258_s0 = inlined_call_operand.hbm [shape: f32[8,32], index: 0, kind: input, shape index: {}]   ;;  %s259_s1 = inlined_call_operand.hbm [shape: bf16[8,32], index: 1, kind: input, shape index: {}]   ;;  %s260_s2 = inlined_call_operand.hbm [shape: f32[1,8,128], index: 2, kind: output, shape index: {}]  }
   0x1   :  { %8 = vsyncpa [#allocation6], 0 }
   0x2   :  { %9 = vsyncpa [#allocation4], 0  ;;  %s15_s11 = sshll.u32 %s258_s0, 4  ;;  %s227_s12 = smov [#allocation2]   ;;  %s16_s11 = int_to_ptr.hbm [resolvable:$true] %s15_s11 }
   0x3   :  { %s17_s13 = sshll.u32 %s227_s12, 4  ;;  %s26_s16 = sshll.u32 %s259_s1, 4  ;;  %s18_s13 = int_to_ptr.vmem [resolvable:$true] %s17_s13  ;;  %s27_s16 = int_to_ptr.hbm [resolvable:$true] %s26_s16 }
   0x4   :  { %20 = dma.hbm_to_vmem [thread:$0]  %s16_s11, 128, %s18_s13, [#allocation3]  }
   0x5   :  { %s228_s17 = smov [#allocation5]  }
   0x6   :  { %s28_s18 = sshll.u32 %s228_s17, 4  ;;  %s29_s18 = int_to_ptr.vmem [resolvable:$true] %s28_s18 }
   0x7   :  { %31 = dma.hbm_to_vmem [thread:$0]  %s27_s16, 64, %s29_s18, [#allocation6]  }
   0x8   :  { %221 = dma.done.wait [#allocation3], 128  }
   0x9   :  { %222 = vsyncadd [#allocation3], 4294967168 }
   0xa   :  { %223 = dma.done.wait [#allocation6], 64  }
   0xb   :  { %224 = vsyncadd [#allocation6], 4294967232  ;;  %v41_v0 = vld [vmem:[#allocation2] sm:$0xff]  ;;  %vm43_vm0 = vcmask 261120   ;;  %v61_v3 = vld [vmem:[#allocation5] sm:$0xf] }
   0xc   :  { %v42_v1 = vmul.f32 %v41_v0, %v41_v0  ;;  %v66_v4 = vsel %vm43_vm0, %v61_v3, 0  ;;  %v86_v13 = vld [vmem:[#allocation5] sm:$0xf]  ;;  %vm95_vm4 = vcmask 64512   ;;  %vm103_vm5 = vcmask 7168   ;;  %s229_s0 = smov [#allocation7]  }
   0xd   :  { %75 = vmatpush.bf16.xpose.msra.mxu0 %v66_v4  ;;  %v87_v16 = vunpack.c.l.bf16 %v86_v13  ;;  %s121_s1 = sshll.u32 %s229_s0, 4  ;;  %s123_s21 = sshll.u32 %s260_s2, 4  ;;  %s122_s1 = int_to_ptr.vmem [resolvable:$true] %s121_s1  ;;  %s124_s21 = int_to_ptr.hbm [resolvable:$true] %s123_s21 }
   0xe   :  { %v44_v2 = vsel %vm43_vm0, %v42_v1, 0.0 }
   0xf   :  { %45 = vadd.xlane.f32.xlu0 %v44_v2 }
  0x82   :  { %v46_v5 = vpop.xlane.xlu0 %45 }
  0x83   :  { %v47_v6 = vmax.f32 %v46_v5, 1e-24 }
  0x85   :  { %143 = vrsqrt.f32 %v47_v6  ;;  %vm54_vm2 = vweird.f32 %v47_v6 }
  0x8b   :  { %v144_v7 = vpop.eup %143 }
  0x8c   :  { %v49_v8 = vmul.f32 %v144_v7, %v47_v6  ;;  %vm55_vm1 = vweird.f32 %v144_v7 }
  0x8d   :  { %vm56_vm3 = vmor %vm54_vm2, %vm55_vm1 }
  0x8e   :  { %v50_v9 = vmul.f32 %v144_v7, %v49_v8 }
  0x90   :  { %v51_v10 = vmul.f32 0.5, %v50_v9 }
  0x92   :  { %v52_v11 = vsub.f32 1.5, %v51_v10 }
  0x94   :  { %v53_v12 = vmul.f32 %v144_v7, %v52_v11 }
  0x96   :  { %v57_v14 = vsel %vm56_vm3, %v144_v7, %v53_v12 }
  0x97   :  { %v58_v15 = vmul.f32 2.0, %v57_v14 }
  0x99   :  { %v59_v17 = vmul.f32 %v58_v15, %v41_v0 }
  0x9b   :  { %v60_v18 = vpack.c.bf16 %v59_v17, %v59_v17  ;;  %v88_v19 = vmul.f32 %v87_v16, %v59_v17 }
  0x9d   :  { %136 = vmatmul.msk.bf16.vlgmr.msra.gmra.mxu0 %vm43_vm0, %v60_v18  ;;  %v89_v20 = vsel %vm43_vm0, %v88_v19, 0.0 }
  0x9e   :  { %90 = vadd.xlane.f32.xlu1 %v89_v20 }
 0x111   :  { %v91_v31 = vpop.xlane.xlu1 %90 }
 0x11a   :  { %v77_v21 = vpop.f32.mrf.mxu0 }
 0x11b   :  { %v137_v22 = vadd.f32 -2.0, %v77_v21 }
 0x11d   :  { %v93_v23 = vmul.f32 1.442695, %v137_v22 }
 0x11f   :  { %145 = vpow2.f32 %v93_v23 }
 0x122   :  { %v79_v24 = vpop.f32.mrf.mxu0 }
 0x125   :  { %v146_v25 = vpop.eup %145 }
 0x126   :  { %v96_v26 = vsel %vm95_vm4, %v146_v25, 0.0 }
 0x127   :  { %97 = vadd.xlane.f32.xlu0 %v96_v26 }
 0x19a   :  { %v98_v27 = vpop.xlane.xlu0 %97 }
 0x19b   :  { %147 = vlog2.f32 %v98_v27 }
 0x1a1   :  { %v148_v28 = vpop.eup %147 }
 0x1a2   :  { %v100_v29 = vmul.f32 0.6931472, %v148_v28 }
 0x1a4   :  { %v101_v30 = vadd.f32 2.0, %v100_v29 }
 0x1a6   :  { %v102_v32 = vsub.f32 %v101_v30, %v91_v31 }
 0x1a8   :  { %v104_v33 = vsel %vm103_vm5, %v102_v32, 0.0 }
 0x1a9   :  { %105 = vadd.xlane.f32.xlu1 %v104_v33 }
 0x21c   :  { %v106_v34 = vpop.xlane.xlu1 %105 }
 0x21d   :  { %v107_v35 = vrot.slane %v106_v34, 4 }
 0x21f   :  { %v108_v36 = vadd.f32 %v107_v35, %v106_v34 }
 0x221   :  { %v109_v37 = vrot.slane %v108_v36, 2 }
 0x223   :  { %v110_v38 = vadd.f32 %v109_v37, %v108_v36 }
 0x225   :  { %v111_v39 = vrot.slane %v110_v38, 1 }
 0x227   :  { %v112_v40 = vadd.f32 %v111_v39, %v110_v38 }
 0x229   :  { %138 = vpush %v112_v40 }
 0x25a   :  { %s139_s22 = spop %138 }
 0x25b   :  { %v114_v41 = vstv %s139_s22 }
 0x25c   :  { %115 = vst [vmem:[#allocation7] sm:$0xff] %v114_v41 }
 0x25d   :  { %126 = dma.vmem_to_hbm [thread:$0]  %s122_s1, 128, %s124_s21, [#allocation4]  }
 0x25e   :  { %225 = dma.done.wait [#allocation4], 128  }
 0x25f   :  { %226 = vsyncadd [#allocation4], 4294967168 }
 0x260   :  { %131 = vsyncpa [#allocation3], 1 }
 0x261   :  { %132 = vsyncpa [#allocation6], 1 }
 0x262   :  { %133 = vsyncpa [#allocation4], 1 }

</bundles_post_ra>
